<compile_context>
chip_gen: v7x
topology: tpu7x:2x2x1
jax: 0.10.0
libtpu: 0.0.40
codegen_flags: <defaults>
</compile_context>

<pallas_src>
import functools

import jax
import jax.numpy as jnp
from jax.experimental import pallas as pl
from jax.experimental.pallas import tpu as pltpu

LANE = 128  # channel-pad granule. TODO(synk): use 256 on v6e/v7x once real
            # YOLOv8 channel counts (>=256) are used, to fill the 256x256 MXU.


def _round_up(x, m):
    return (x + m - 1) // m * m


def _choose_tile_m(m, target=2048):
    """M tile: big enough to amortize the ~0.35us/step pipeline overhead,
    small enough to keep >=2 grid steps (v7x has 2 TensorCores) and to stay
    far below a 64 MiB (v7x) VMEM budget at these channel widths."""
    tm = min(target, _round_up(m, 8))
    if m > 8:
        tm = min(tm, _round_up(pl.cdiv(m, 2), 8))  # ensure >= 2 grid steps
    return max(tm, 8)


# ----------------------------------------------------------------------------
# Capability probe: pipeline_mode=pl.Buffered(1) (single-buffered resident
# operands) is a recent Pallas TPU feature; probe once and fall back to the
# default (double-buffered, constant index_map) resident spec if rejected.
# ----------------------------------------------------------------------------
_SINGLE_BUFFER_PROBE = None


def _probe_kernel(x_ref, o_ref):
    o_ref[...] = x_ref[...] * 2.0


def _single_buffered_weights_supported():
    global _SINGLE_BUFFER_PROBE
    if _SINGLE_BUFFER_PROBE is None:
        try:
            fn = pl.pallas_call(
                _probe_kernel,
                out_shape=jax.ShapeDtypeStruct((16, 128), jnp.float32),
                grid=(2,),
                in_specs=[pl.BlockSpec((8, 128), lambda i: (0, 0),
                                       pipeline_mode=pl.Buffered(1))],
                out_specs=pl.BlockSpec((8, 128), lambda i: (i, 0)),
            )
            jax.block_until_ready(fn(jnp.ones((8, 128), jnp.float32)))
            _SINGLE_BUFFER_PROBE = True
        except Exception:
            _SINGLE_BUFFER_PROBE = False
    return _SINGLE_BUFFER_PROBE


# ----------------------------------------------------------------------------
# Fused Pallas kernel.  One grid step = one (tm, K) tile of tap-packed pixels:
#   y1  = X_tap @ W1_packed + b1      (ONE K-packed MXU dot = whole 3x3 conv)
#   a1  = SiLU(y1)                    (f32 epilogue)
#   out = SiLU(a1_bf16 @ W2 + b2)     (fused 1x1 Conv; a1 never leaves VMEM)
# ----------------------------------------------------------------------------
def _fused_stem_kernel(x_ref, w1_ref, b1_ref, w2_ref, b2_ref, o_ref):
    y1 = jnp.dot(x_ref[...], w1_ref[...], preferred_element_type=jnp.float32)
    y1 = y1 + b1_ref[...]                          # folded-BN bias (f32)
    a1 = y1 * jax.nn.sigmoid(y1)                   # SiLU
    y2 = jnp.dot(a1.astype(jnp.bfloat16), w2_ref[...],
                 preferred_element_type=jnp.float32) + b2_ref[...]
    o_ref[...] = (y2 * jax.nn.sigmoid(y2)).astype(o_ref.dtype)   # bf16 store


def _fused_conv_stem(x2d, w1, b1, w2, b2, *, tm, single_buffer_weights):
    """x2d: (m_pad, k_pad) bf16 tap-packed pixels; returns (m_pad, c2_pad) bf16."""
    m_pad, k_pad = x2d.shape
    c1p = w1.shape[1]
    c2p = w2.shape[1]
    assert m_pad % tm == 0 and tm % 8 == 0
    assert k_pad % LANE == 0 and c1p % LANE == 0 and c2p % LANE == 0
    n_tiles = m_pad // tm

    def resident(shape):
        idx = lambda i: (0,) * len(shape)
        if single_buffer_weights:
            return pl.BlockSpec(shape, idx, pipeline_mode=pl.Buffered(1))
        return pl.BlockSpec(shape, idx)   # still VMEM-resident (constant window)

    cost = pl.CostEstimate(
        flops=2 * m_pad * k_pad * c1p + 2 * m_pad * c1p * c2p,
        transcendentals=m_pad * (c1p + c2p),
        bytes_accessed=(x2d.size * 2 + w1.size * 2 + w2.size * 2
                        + b1.size * 4 + b2.size * 4 + m_pad * c2p * 2),
    )
    # TODO(synk): for real YOLOv8 channel counts add N (and K) grid axes with
    # an f32 accumulator scratch, 256-multiple tiles on v6e/v7x, and an fp8
    # weight path on v7x (its MXU is fp8+bf16 only).
    return pl.pallas_call(
        _fused_stem_kernel,
        out_shape=jax.ShapeDtypeStruct((m_pad, c2p), jnp.bfloat16),
        grid=(n_tiles,),
        in_specs=[
            pl.BlockSpec((tm, k_pad), lambda i: (i, 0)),   # streamed activations
            resident((k_pad, c1p)),                        # resident weights
            resident((1, c1p)),
            resident((c1p, c2p)),
            resident((1, c2p)),
        ],
        out_specs=pl.BlockSpec((tm, c2p), lambda i: (i, 0)),  # lane-dense bf16
        compiler_params=pltpu.CompilerParams(
            dimension_semantics=("parallel",),
            vmem_limit_bytes=32 * 1024 * 1024,
        ),
        cost_estimate=cost,
    )(x2d, w1, b1, w2, b2)


# ----------------------------------------------------------------------------
# YOLOv8LRP forward equivalent: wraps a deterministic tiny YOLOv8-style model.
# ----------------------------------------------------------------------------
class YOLOv8LRPPallas:
    """forward(x) == model(x); model = Conv(3x3) -> Conv(1x1), NCHW in/out."""

    def __init__(self, cin=4, c1=8, c2=8, eps=1e-6, key=jax.random.PRNGKey(42)):
        k0, k1, k2, k3 = jax.random.split(key, 4)
        self.cin, self.c1, self.c2 = cin, c1, c2
        # Conv block 1: 3x3, cin -> c1 (PyTorch OIHW weights) + BN params.
        self.w1 = jax.random.normal(k0, (c1, cin, 3, 3), jnp.float32) * 0.1
        gamma1 = 1.0 + 0.05 * jax.random.normal(k1, (c1,), jnp.float32)
        beta1 = 0.01 * jnp.arange(c1, dtype=jnp.float32)
        mean1 = jnp.zeros((c1,), jnp.float32)
        var1 = jnp.ones((c1,), jnp.float32)
        self.s1 = gamma1 / jnp.sqrt(var1 + eps)
        self.b1 = beta1 - mean1 * self.s1
        # Conv block 2: 1x1, c1 -> c2 + BN params.
        self.w2 = jax.random.normal(k2, (c2, c1, 1, 1), jnp.float32) * 0.1
        gamma2 = 1.0 + 0.05 * jax.random.normal(k3, (c2,), jnp.float32)
        beta2 = -0.01 * jnp.arange(c2, dtype=jnp.float32)
        mean2 = jnp.zeros((c2,), jnp.float32)
        var2 = jnp.ones((c2,), jnp.float32)
        self.s2 = gamma2 / jnp.sqrt(var2 + eps)
        self.b2 = beta2 - mean2 * self.s2

        # ---- fold BN into weights, tap-pack (K = 9*cin), pad, cast bf16 ----
        self.k_pad = _round_up(9 * cin, LANE)    # contraction dim (taps x cin)
        self.c1_pad = _round_up(c1, LANE)        # lane-dense hidden channels
        self.c2_pad = _round_up(c2, LANE)        # lane-dense output channels
        w1_hwio = (jnp.transpose(self.w1, (2, 3, 1, 0))
                   * self.s1[None, None, None, :])          # (3,3,cin,c1), folded
        self.w1_q = w1_hwio.astype(jnp.bfloat16)             # reference weights
        w1_flat = self.w1_q.reshape(9 * cin, c1)              # k = (dy*3+dx)*cin+c
        self.w1_kpack = jnp.pad(w1_flat, ((0, self.k_pad - 9 * cin),
                                          (0, self.c1_pad - c1)))
        self.b1_pad = jnp.pad(self.b1, (0, self.c1_pad - c1)).reshape(1, self.c1_pad)
        w2_mat = self.w2[:, :, 0, 0].T * self.s2[None, :]     # (c1, c2), folded
        self.w2_q = w2_mat.astype(jnp.bfloat16)
        self.w2_kpack = jnp.pad(self.w2_q, ((0, self.c1_pad - c1),
                                            (0, self.c2_pad - c2)))
        self.b2_pad = jnp.pad(self.b2, (0, self.c2_pad - c2)).reshape(1, self.c2_pad)
        # Probe Buffered(1) support once (outside jit); fall back gracefully.
        self._single_buffer = _single_buffered_weights_supported()
        # TODO(synk): for real YOLOv8 Cin (>=64) the 9x wrapper-side tap
        # duplication should move in-kernel (dy-aligned sublane slices into a
        # VMEM scratch) to avoid the expanded HBM copy; the full backbone/head
        # and the LRP explain() machinery are not reproduced here.

    @functools.partial(jax.jit, static_argnums=0)
    def forward(self, x_nchw):
        B, Cin, H, W = x_nchw.shape
        assert Cin == self.cin
        # NCHW -> NHWC, cast to bf16 BEFORE any padding / packing.
        x = jnp.transpose(x_nchw, (0, 2, 3, 1)).astype(jnp.bfloat16)
        xp = jnp.pad(x, ((0, 0), (1, 1), (1, 1), (0, 0)))     # SAME-conv halo
        # Fold the 3x3 taps into the channel (K) axis: (dy, dx, cin) -> 9*cin,
        # matching the w1_kpack row order; the kernel then runs the whole conv
        # as ONE lane-dense, K-packed MXU dot per tile.
        taps = [xp[:, dy:dy + H, dx:dx + W, :]
                for dy in range(3) for dx in range(3)]
        xcol = jnp.concatenate(taps, axis=-1)                  # (B, H, W, 9*cin)
        xcol = jnp.pad(xcol, ((0, 0), (0, 0), (0, 0),
                              (0, self.k_pad - 9 * Cin)))
        m = B * H * W
        x2d = xcol.reshape(m, self.k_pad)
        tm = _choose_tile_m(m)
        m_pad = _round_up(m, tm)
        x2d = jnp.pad(x2d, ((0, m_pad - m), (0, 0)))           # tail rows discarded
        out = _fused_conv_stem(x2d, self.w1_kpack, self.b1_pad,
                               self.w2_kpack, self.b2_pad,
                               tm=tm, single_buffer_weights=self._single_buffer)
        # (m_pad, c2_pad) bf16 -> (B, c2, H, W) f32 (layout work stays bf16).
        out = out[:m, :self.c2].reshape(B, H, W, self.c2)
        return jnp.transpose(out, (0, 3, 1, 2)).astype(jnp.float32)

    def __call__(self, x):
        return self.forward(x)


# ----------------------------------------------------------------------------
# Pure-JAX reference (same bf16-quantised folded weights / same quantisation
# points as the kernel so the comparison checks the plumbing tightly).
# ----------------------------------------------------------------------------
def _reference(model, x_nchw):
    x = jnp.transpose(x_nchw, (0, 2, 3, 1)).astype(jnp.bfloat16).astype(jnp.float32)
    w1 = model.w1_q.astype(jnp.float32)                       # (3,3,cin,c1) HWIO
    y1 = jax.lax.conv_general_dilated(
        x, w1, window_strides=(1, 1), padding="SAME",
        dimension_numbers=("NHWC", "HWIO", "NHWC"))
    y1 = y1 + model.b1[None, None, None, :]
    a1 = y1 * jax.nn.sigmoid(y1)
    a1 = a1.astype(jnp.bfloat16).astype(jnp.float32)           # kernel feeds a1 bf16
    w2 = model.w2_q.astype(jnp.float32)                        # (c1, c2)
    y2 = jnp.einsum("bhwc,cd->bhwd", a1, w2) + model.b2[None, None, None, :]
    a2 = (y2 * jax.nn.sigmoid(y2)).astype(jnp.bfloat16).astype(jnp.float32)
    return jnp.transpose(a2, (0, 3, 1, 2))


if __name__ == "__main__":
    key = jax.random.PRNGKey(0)
    x = jax.random.normal(key, (2, 4, 16, 16), jnp.float32)    # NCHW, like PyTorch

    model = YOLOv8LRPPallas(cin=4, c1=8, c2=8)
    out = jax.block_until_ready(model(x))

    ref = _reference(model, x)
    assert out.shape == (2, 8, 16, 16), out.shape
    max_err = float(jnp.max(jnp.abs(out - ref)))
    assert jnp.allclose(out, ref, atol=2e-2, rtol=2e-2), max_err
    print("KERNEL_OK")
</pallas_src>

<mosaic_0001>
module attributes {stable_mosaic.version = 11 : i64} {
  func.func @_probe_kernel(%arg0: i32, %arg1: memref<8x128xf32, #tpu.memory_space<vmem>>, %arg2: memref<8x128xf32, #tpu.memory_space<vmem>>) attributes {dimension_semantics = [#tpu.dimension_semantics<arbitrary>], iteration_bounds = array<i64: 2>, scalar_prefetch = 0 : i64, scratch_operands = 0 : i64, tpu.core_type = #tpu.core_type<tc>, window_params = [{pipeline_mode = #tpu.pipeline_mode<synchronous>, transform_indices = @transform_0, window_bounds = array<i64: 8, 128>}, {transform_indices = @transform_1, window_bounds = array<i64: 8, 128>}]} {
    %c0 = arith.constant 0 : index
    %c0_0 = arith.constant 0 : index
    %0 = vector.load %arg1[%c0, %c0_0] : memref<8x128xf32, #tpu.memory_space<vmem>>, vector<8x128xf32>
    %cst = arith.constant 2.000000e+00 : f32
    %1 = vector.broadcast %cst : f32 to vector<8x128xf32>
    %2 = arith.mulf %0, %1 : vector<8x128xf32>
    %c0_1 = arith.constant 0 : index
    %c0_2 = arith.constant 0 : index
    %3 = vector.load %arg2[%c0_1, %c0_2] : memref<8x128xf32, #tpu.memory_space<vmem>>, vector<8x128xf32>
    tpu.vector_store %arg2[%c0_1, %c0_2], %2 {strides = array<i32>} : memref<8x128xf32, #tpu.memory_space<vmem>>, vector<8x128xf32>,
    return
  }
  func.func @transform_0(%arg0: i32) -> (i32, i32) {
    %c0_i32 = arith.constant 0 : i32
    %c0_i32_0 = arith.constant 0 : i32
    %c0_i32_1 = arith.constant 0 : i32
    return %c0_i32, %c0_i32_0 : i32, i32
  }
  func.func @transform_1(%arg0: i32) -> (i32, i32) {
    %c0_i32 = arith.constant 0 : i32
    %c0_i32_0 = arith.constant 0 : i32
    return %arg0, %c0_i32 : i32, i32
  }
}

module attributes {stable_mosaic.version = 11 : i64} {
  func.func @_fused_stem_kernel(%arg0: i32, %arg1: memref<256x128xbf16, #tpu.memory_space<vmem>>, %arg2: memref<128x128xbf16, #tpu.memory_space<vmem>>, %arg3: memref<1x128xf32, #tpu.memory_space<vmem>>, %arg4: memref<128x128xbf16, #tpu.memory_space<vmem>>, %arg5: memref<1x128xf32, #tpu.memory_space<vmem>>, %arg6: memref<256x128xbf16, #tpu.memory_space<vmem>>) attributes {dimension_semantics = [#tpu.dimension_semantics<parallel>], iteration_bounds = array<i64: 2>, scalar_prefetch = 0 : i64, scratch_operands = 0 : i64, tpu.core_type = #tpu.core_type<tc>, window_params = [{transform_indices = @transform_0, window_bounds = array<i64: 256, 128>}, {pipeline_mode = #tpu.pipeline_mode<synchronous>, transform_indices = @transform_1, window_bounds = array<i64: 128, 128>}, {pipeline_mode = #tpu.pipeline_mode<synchronous>, transform_indices = @transform_2, window_bounds = array<i64: 1, 128>}, {pipeline_mode = #tpu.pipeline_mode<synchronous>, transform_indices = @transform_3, window_bounds = array<i64: 128, 128>}, {pipeline_mode = #tpu.pipeline_mode<synchronous>, transform_indices = @transform_4, window_bounds = array<i64: 1, 128>}, {transform_indices = @transform_5, window_bounds = array<i64: 256, 128>}]} {
    %c0 = arith.constant 0 : index
    %c0_0 = arith.constant 0 : index
    %0 = vector.load %arg1[%c0, %c0_0] : memref<256x128xbf16, #tpu.memory_space<vmem>>, vector<256x128xbf16>
    %c0_1 = arith.constant 0 : index
    %c0_2 = arith.constant 0 : index
    %1 = vector.load %arg2[%c0_1, %c0_2] : memref<128x128xbf16, #tpu.memory_space<vmem>>, vector<128x128xbf16>
    %cst = arith.constant dense<0.000000e+00> : vector<256x128xf32>
    %2 = tpu.matmul %0, %1, %cst {dimension_numbers = #tpu.dot_dimension_numbers<[1], [0], [0], [1], [0, 0, 1, 1], [], []>} : vector<256x128xbf16>, vector<128x128xbf16>, vector<256x128xf32> -> vector<256x128xf32>
    %c0_3 = arith.constant 0 : index
    %c0_4 = arith.constant 0 : index
    %3 = vector.load %arg3[%c0_3, %c0_4] : memref<1x128xf32, #tpu.memory_space<vmem>>, vector<1x128xf32>
    %4 = vector.broadcast %3 : vector<1x128xf32> to vector<256x128xf32>
    %5 = arith.addf %2, %4 : vector<256x128xf32>
    %6 = arith.negf %5 : vector<256x128xf32>
    %7 = math.exp %6 : vector<256x128xf32>
    %cst_5 = arith.constant 1.000000e+00 : f32
    %8 = vector.broadcast %cst_5 : f32 to vector<256x128xf32>
    %9 = arith.addf %8, %7 : vector<256x128xf32>
    %10 = arith.divf %8, %9 : vector<256x128xf32>
    %11 = arith.mulf %5, %10 : vector<256x128xf32>
    %12 = arith.truncf %11 : vector<256x128xf32> to vector<256x128xbf16>
    %c0_6 = arith.constant 0 : index
    %c0_7 = arith.constant 0 : index
    %13 = vector.load %arg4[%c0_6, %c0_7] : memref<128x128xbf16, #tpu.memory_space<vmem>>, vector<128x128xbf16>
    %cst_8 = arith.constant dense<0.000000e+00> : vector<256x128xf32>
    %14 = tpu.matmul %12, %13, %cst_8 {dimension_numbers = #tpu.dot_dimension_numbers<[1], [0], [0], [1], [0, 0, 1, 1], [], []>} : vector<256x128xbf16>, vector<128x128xbf16>, vector<256x128xf32> -> vector<256x128xf32>
    %c0_9 = arith.constant 0 : index
    %c0_10 = arith.constant 0 : index
    %15 = vector.load %arg5[%c0_9, %c0_10] : memref<1x128xf32, #tpu.memory_space<vmem>>, vector<1x128xf32>
    %16 = vector.broadcast %15 : vector<1x128xf32> to vector<256x128xf32>
    %17 = arith.addf %14, %16 : vector<256x128xf32>
    %18 = arith.negf %17 : vector<256x128xf32>
    %19 = math.exp %18 : vector<256x128xf32>
    %cst_11 = arith.constant 1.000000e+00 : f32
    %20 = vector.broadcast %cst_11 : f32 to vector<256x128xf32>
    %21 = arith.addf %20, %19 : vector<256x128xf32>
    %22 = arith.divf %20, %21 : vector<256x128xf32>
    %23 = arith.mulf %17, %22 : vector<256x128xf32>
    %24 = arith.truncf %23 : vector<256x128xf32> to vector<256x128xbf16>
    %c0_12 = arith.constant 0 : index
    %c0_13 = arith.constant 0 : index
    %25 = vector.load %arg6[%c0_12, %c0_13] : memref<256x128xbf16, #tpu.memory_space<vmem>>, vector<256x128xbf16>
    tpu.vector_store %arg6[%c0_12, %c0_13], %24 {strides = array<i32>} : memref<256x128xbf16, #tpu.memory_space<vmem>>, vector<256x128xbf16>,
    return
  }
  func.func @transform_0(%arg0: i32) -> (i32, i32) {
    %c0_i32 = arith.constant 0 : i32
    %c0_i32_0 = arith.constant 0 : i32
    return %arg0, %c0_i32 : i32, i32
  }
  func.func @transform_1(%arg0: i32) -> (i32, i32) {
    %c0_i32 = arith.constant 0 : i32
    %c0_i32_0 = arith.constant 0 : i32
    %c0_i32_1 = arith.constant 0 : i32
    return %c0_i32, %c0_i32_0 : i32, i32
  }
  func.func @transform_2(%arg0: i32) -> (i32, i32) {
    %c0_i32 = arith.constant 0 : i32
    %c0_i32_0 = arith.constant 0 : i32
    %c0_i32_1 = arith.constant 0 : i32
    return %c0_i32, %c0_i32_0 : i32, i32
  }
  func.func @transform_3(%arg0: i32) -> (i32, i32) {
    %c0_i32 = arith.constant 0 : i32
    %c0_i32_0 = arith.constant 0 : i32
    %c0_i32_1 = arith.constant 0 : i32
    return %c0_i32, %c0_i32_0 : i32, i32
  }
  func.func @transform_4(%arg0: i32) -> (i32, i32) {
    %c0_i32 = arith.constant 0 : i32
    %c0_i32_0 = arith.constant 0 : i32
    %c0_i32_1 = arith.constant 0 : i32
    return %c0_i32, %c0_i32_0 : i32, i32
  }
  func.func @transform_5(%arg0: i32) -> (i32, i32) {
    %c0_i32 = arith.constant 0 : i32
    %c0_i32_0 = arith.constant 0 : i32
    return %arg0, %c0_i32 : i32, i32
  }
}

</mosaic_0001>

<bundles_post_ra>
// kernel: tpu_custom_call.1
= control target key start
LH: loop header
LB: loop body
LE: loop exit
PB: predicated region body
PF: predicated region fallthrough
CT: control target
= control target key end

     0   :  { %6 = vsyncpa [#allocation3], 0  ;;  %s482_s0 = inlined_call_operand.hbm [shape: f32[8,128], index: 0, kind: input, shape index: {}]   ;;  %s483_s1 = inlined_call_operand.hbm [shape: f32[16,128], index: 1, kind: output, shape index: {}]  }
   0x1   :  { %7 = vsyncpa [#allocation4], 0 }
   0x2   :  { %9 = vsyncpa [#allocation4 + $0x1], 0  ;;  %s352_s6 = smov 0   ;;  %s354_s7 = smov 0  }
   0x3   :  { %s356_s8 = smov 0   ;;  %s358_s9 = smov 0  }
   0x4 LB: > { %s373_s10 = sadd.s32 4294967295, %s338_s9   ;;  %s184_s11 = sadd.s32 4294967294, %s338_s9   ;;  %s338_s9 = sphi %s358_s9, %s499_s9   ;;  %s334_s8 = sphi %s356_s8, %s498_s8   ;;  %s330_s7 = sphi %s354_s7, %s497_s7   ;;  %s326_s6 = sphi %s352_s6, %s496_s6  }
   0x5   : > { %s377_s12 = sadd.s32 1, %s338_s9   ;;  %s43_s13 = sadd.s32 1, %s334_s8 }
   0x6   : > { %s40_s14 = ssub.s32 %s338_s9, %s377_s12  ;;  %p53_p0 = scmp.ne.s32.totalorder %s334_s8, %s330_s7 }
   0x7   : > { %p41_p1 = scmp.eq.s32.totalorder %s40_s14, 0  ;;  %p54_p2 = scmp.eq.s32.totalorder %s373_s10, 1 }
   0x8   : > { %p59_p3 = scmp.ne.s32.totalorder %s330_s7, %s326_s6  ;;  %p60_p4 = scmp.eq.s32.totalorder %s184_s11, 1 }
   0x9   : > { %s388_s15 = scalar_select %p41_p1, %s334_s8, %s43_s13  }
   0xa   : > { %p390_p5 = por %p54_p2, %p53_p0  ;;  %p394_p6 = por %p60_p4, %p59_p3 }
   0xb   : > { %p185_p7 = scmp.ge.s32.totalorder %s338_s9, 1  ;;  %p67_p8 = scmp.lt.s32.totalorder %s338_s9, 3 }
   0xc   : > { %s487_s16 = scalar_select %p390_p5, 1, 0 }
   0xd   : > { %s488_s17 = scalar_select %p394_p6, 1, 0 }
   0xe   : > { %p484_p9 = scmp.eq.s32.totalorder %s373_s10, 0  ;;  %p401_p10 = pnand %p185_p7, %p67_p8 }
   0xf   : > { %s340_s19 = smov [#allocation2]   ;;  %s244_s24 = scalar_lea.hbm %s482_s0, 128 }
  0x10   : > { %s489_s18 = scalar_select %p401_p10, 1, 0 }
  0x11   : > { %s80_s20 = sshll.u32 %s340_s19, 4  ;;  %p200_p11 = pneg %p401_p10  ;;  %s81_s20 = int_to_ptr.vmem [resolvable:$true] %s80_s20 }
  0x12   : > { %p245_p13 = scmp.ne.s32.totalorder %s482_s0, %s244_s24  ;;  %p251_p3 = scmp.lt.u32.totalorder %s244_s24, %s482_s0 }
  0x13   : > { %p409_p12 = pnand %p484_p9, %p200_p11 }
  0x15   : > { %p246_p0 = pneg %p409_p12 }
  0x17   : > { %p247_p1 = pnand %p246_p0, %p245_p13 }
  0x19   : > { %p248_p2 = pneg %p247_p1 }
  0x1b   : > { %p253_p4 = pnand %p251_p3, %p248_p2 }
  0x1d   : > { %256 = shalt.err (!%p253_p4)
}
  0x1e   : > { %s257_s29 = scalar_lea.vmem %s81_s20, 128  ;;  %p265_p9 = scmp.lt.s32.totalorder %s81_s20, %s81_s20 }
  0x1f   : > { %p258_p7 = scmp.ne.s32.totalorder %s81_s20, %s257_s29  ;;  %p266_p6 = scmp.lt.s32.totalorder %s257_s29, %s257_s29 }
  0x21   : > { %p260_p8 = pnand %p258_p7, %p246_p0  ;;  %p267_p5 = por %p266_p6, %p265_p9 }
  0x23   : > { %p261_p11 = pneg %p260_p8 }
  0x25   : > { %p268_p10 = pnand %p267_p5, %p261_p11 }
  0x27   : > { %271 = shalt.err (!%p268_p10)
}
  0x28   : > { %203 = dma.hbm_to_vmem [thread:$0]  (!%p409_p12), %s482_s0, 128, %s81_s20, [#allocation3]  }
  0x29   : > { %p491_p13 = scmp.ne.s32.totalorder %s489_s18, 0 }
  0x2a   : > { %p492_p1 = scmp.eq.s32.totalorder (!%p491_p13), %s373_s10, 0 }
  0x2b   : > { %93 = sbr.rel (%p491_p13) target bundleno = 77 (0x4d), region = 24 }
  0x32   : > { %317 = dma.done.wait (%p492_p1), [#allocation3], 128   ;;  %p493_p0 = pmov %p492_p1 }
  0x33   : > { %s105_s3 = sand.u32 1, %s330_s7   ;;  %s191_s13 = sshll.u32 %s373_s10, 7  ;;  %v108_v0 = vld [vmem:[#allocation2] sm:$0xff] }
  0x34   : > { %319 = vsyncadd (%p493_p0), [#allocation3], 4294967168  ;;  %s189_s4 = sshll.u32 %s105_s3, 3  ;;  %v109_v1 = vmul.f32 2.0, %v108_v0  ;;  %s442_s19 = scalar_lea.hbm %s483_s1, %s191_s13 }
  0x35   : > { %s107_s5 = scalar_lea.vmem [#allocation5], %s189_s4  ;;  %s112_s20 = scalar_lea.sflag [#allocation4], %s105_s3 }
  0x36   : > { %s125_s11 = sshll.u32 %s107_s5, 4  ;;  %110 = vst [vmem:[%s107_s5] sm:$0xff] %v109_v1  ;;  %p494_p6 = scmp.ne.s32.totalorder %s487_s16, 0  ;;  %s437_s11 = int_to_ptr.vmem [resolvable:$true] %s125_s11 }
  0x37   : > { %s272_s21 = scalar_lea.vmem %s437_s11, 128  ;;  %s341_s10 = smov [#allocation5]  }
  0x38   : > { %p273_p5 = scmp.ne.s32.totalorder %s437_s11, %s272_s21  ;;  %s276_s22 = sshll.u32 %s341_s10, 4  ;;  %s277_s22 = int_to_ptr.vmem [resolvable:$false] %s276_s22 }
  0x39   : > { %s278_s23 = scalar_lea.vmem %s277_s22, 256  ;;  %p279_p12 = scmp.lt.s32.totalorder %s437_s11, %s277_s22 }
  0x3a   : > { %p274_p9 = pnand %p273_p5, %p494_p6  ;;  %p280_p2 = scmp.lt.s32.totalorder %s278_s23, %s272_s21 }
  0x3c   : > { %p275_p10 = pneg %p274_p9  ;;  %p281_p3 = por %p280_p2, %p279_p12 }
  0x3e   : > { %p282_p4 = pnand %p281_p3, %p275_p10 }
  0x40   : > { %285 = shalt.err (!%p282_p4)
}
  0x41   : > { %s286_s24 = scalar_lea.hbm %s442_s19, 128  ;;  %s290_s27 = scalar_lea.hbm %s483_s1, 256 }
  0x42   : > { %p287_p7 = scmp.ne.s32.totalorder %s442_s19, %s286_s24  ;;  %p291_p13 = scmp.lt.u32.totalorder %s442_s19, %s483_s1 }
  0x43   : > { %p292_p1 = scmp.lt.u32.totalorder %s290_s27, %s286_s24  ;;  %p294_p5 = scmp.lt.u32.totalorder %s286_s24, %s442_s19 }
  0x44   : > { %p288_p8 = pnand %p287_p7, %p494_p6 }
  0x45   : > { %p293_p0 = por %p292_p1, %p291_p13 }
  0x46   : > { %p289_p11 = pneg %p288_p8 }
  0x47   : > { %p295_p9 = por %p294_p5, %p293_p0 }
  0x49   : > { %p296_p10 = pnand %p295_p9, %p289_p11 }
  0x4b   : > { %299 = shalt.err (!%p296_p10)
}
  0x4c   : > { %198 = dma.vmem_to_hbm [thread:$0]  (%p494_p6), %s437_s11, 128, %s442_s19, %s112_s20  }
  0x4d PF: > { %p210_p12 = scmp.ge.s32.totalorder %s338_s9, 2  ;;  %s137_s30 = sand.u32 1, %s326_s6  }
  0x4e   : > { %p495_p2 = scmp.ne.s32.totalorder %s488_s17, 0  ;;  %s138_s2 = scalar_lea.sflag [#allocation4], %s137_s30 }
  0x50   : > { %p205_p3 = pnand %p210_p12, %p495_p2 }
  0x52   : > { %321 = dma.done.wait (!%p205_p3), %s138_s2, 128  }
  0x53   : > { %323 = vsyncadd (!%p205_p3), %s138_s2, 4294967168  ;;  %p12_p4 = scmp.ge.s32.totalorder %s377_s12, 4   ;;  %s496_s6 = smov %s330_s7 }
  0x54   : > { %s497_s7 = smov %s334_s8  ;;  %s498_s8 = smov %s388_s15 }
  0x55   : > { %s499_s9 = smov %s377_s12  ;;  %14 = sbr.rel (!%p12_p4) target bundleno = 4 (0x4), region = 61 }
  0x5c   :  { %143 = vsyncpa [#allocation3], 1 }
  0x5d   :  { %145 = vsyncpa [#allocation3 + $0x1], 1 }
  0x5e   :  { %146 = vsyncpa [#allocation4], 1 }
  0x5f   :  { %148 = vsyncpa [#allocation4 + $0x1], 1 }

// kernel: forward.1
= control target key start
LH: loop header
LB: loop body
LE: loop exit
PB: predicated region body
PF: predicated region fallthrough
CT: control target
= control target key end

     0   :  { %s2247_s18 = smov 0   ;;  %s2685_s0 = inlined_call_operand.vmem [shape: bf16[512,128], index: 0, kind: input, shape index: {}]   ;;  %s2686_s1 = inlined_call_operand.vmem [shape: bf16[128,128], index: 1, kind: input, shape index: {}]   ;;  %s2687_s2 = inlined_call_operand.vmem [shape: f32[1,128], index: 2, kind: input, shape index: {}]   ;;  %s2688_s3 = inlined_call_operand.vmem [shape: bf16[128,128], index: 3, kind: input, shape index: {}]   ;;  %s2689_s4 = inlined_call_operand.vmem [shape: f32[1,128], index: 4, kind: input, shape index: {}]   ;;  %s2690_s5 = inlined_call_operand.vmem [shape: bf16[512,128], index: 5, kind: output, shape index: {}]  }
   0x1 LB: > { %s1501_s19 = sadd.s32 4294967295, %s2215_s18   ;;  %p1505_p0 = scmp.ge.s32.totalorder %s2215_s18, 1  ;;  %s2215_s18 = sphi %s2247_s18, %s15_s18  }
   0x2   : > { %p188_p1 = scmp.lt.s32.totalorder %s2215_s18, 3 }
   0x4   : > { %p189_p2 = pnand %p1505_p0, %p188_p1 }
   0x5   : > { %v1921_v0 = vld [vmem:[%s2686_s1] sm:$0xff] (!%p189_p2)   ;;  %s1506_s22 = sshll.u32 (!%p189_p2), %s1501_s19, 5  ;;  %v1922_v1 = vld [vmem:[%s2686_s1 + $0x8] sm:$0xff] (!%p189_p2)   ;;  %v1923_v2 = vld [vmem:[%s2686_s1 + $0x10] sm:$0xff] (!%p189_p2)  }
   0x6   : > { %192 = sbr.rel (%p189_p2) target bundleno = 594 (0x252), region = 40  ;;  %p217_p3 = scmp.lt.s32.totalorder (!%p189_p2), %s1506_s22, 63  ;;  %1817 = vmatprep.subr.bf16.mxu0 (!%p189_p2), %v1921_v0  ;;  %v1924_v3 = vld [vmem:[%s2686_s1 + $0x18] sm:$0xff] (!%p189_p2)   ;;  %v1925_v5 = vld [vmem:[%s2686_s1 + $0x20] sm:$0xff] (!%p189_p2)   ;;  %v1926_v6 = vld [vmem:[%s2686_s1 + $0x28] sm:$0xff] (!%p189_p2)  }
   0x7   : > { %1818 = vmatpush3.bf16.msra.mxu0 (!%p189_p2), %v1921_v0  ;;  %v1927_v7 = vld [vmem:[%s2686_s1 + $0x30] sm:$0xff] (!%p189_p2)   ;;  %v1928_v8 = vld [vmem:[%s2686_s1 + $0x38] sm:$0xff] (!%p189_p2)   ;;  %v1945_v24 = vld [vmem:[%s2688_s3] sm:$0xff] (!%p189_p2)  }
   0x8   : > { %1819 = vmatprep.subr.bf16.mxu0 (!%p189_p2), %v1922_v1  ;;  %1865 = vmatprep.subr.bf16.mxu1 (!%p189_p2), %v1945_v24  ;;  %v1946_v25 = vld [vmem:[%s2688_s3 + $0x8] sm:$0xff] (!%p189_p2)   ;;  %v1947_v26 = vld [vmem:[%s2688_s3 + $0x10] sm:$0xff] (!%p189_p2)   ;;  %v1948_v27 = vld [vmem:[%s2688_s3 + $0x18] sm:$0xff] (!%p189_p2)  }
   0x9   : > { %1866 = vmatpush3.bf16.msra.mxu1 (!%p189_p2), %v1945_v24  ;;  %v1949_v28 = vld [vmem:[%s2688_s3 + $0x20] sm:$0xff] (!%p189_p2)   ;;  %v1950_v29 = vld [vmem:[%s2688_s3 + $0x28] sm:$0xff] (!%p189_p2)   ;;  %v1951_v30 = vld [vmem:[%s2688_s3 + $0x30] sm:$0xff] (!%p189_p2)  }
   0xa   : > { %1867 = vmatprep.subr.bf16.mxu1 (!%p189_p2), %v1946_v25  ;;  %v1952_v31 = vld [vmem:[%s2688_s3 + $0x38] sm:$0xff] (!%p189_p2)   ;;  %v2332_v32 = vld [vmem:[%s2687_s2] ss:$0 sm:$0xff] (!%p189_p2) }
   0xb   : > { %1820 = vmatpush3.bf16.msra.mxu0 (!%p189_p2), %v1922_v1 }
   0xc   : > { %1821 = vmatprep.subr.bf16.mxu0 (!%p189_p2), %v1923_v2 }
   0xd   : > { %s2692_s22 = smov (!%p217_p3, %s1506_s22), 63  ;;  %1868 = vmatpush3.bf16.msra.mxu1 %v1946_v25 }
   0xe   : > { %s1507_s27 = sshll.u32 %s2692_s22, 2  ;;  %1869 = vmatprep.subr.bf16.mxu1 %v1947_v26 }
   0xf   : > { %s2272_s30 = scalar_lea.vmem %s2685_s0, %s1507_s27  ;;  %1822 = vmatpush3.bf16.msra.mxu0 %v1923_v2  ;;  %s2569_s16 = scalar_lea.vmem %s2690_s5, %s1507_s27 }
  0x10   : > { %v1929_v4 = vld [vmem:[%s2272_s30] sm:$0xff]   ;;  %1823 = vmatprep.subr.bf16.mxu0 %v1924_v3  ;;  %v1930_v9 = vld [vmem:[%s2272_s30 + $0x8] sm:$0xff]   ;;  %v1931_v10 = vld [vmem:[%s2272_s30 + $0x10] sm:$0xff]  }
  0x11   : > { %1833 = vmatprep.mubr.bf16.mxu0 %v1929_v4  ;;  %v1932_v11 = vld [vmem:[%s2272_s30 + $0x18] sm:$0xff]   ;;  %v1933_v12 = vld [vmem:[%s2272_s30 + $0x20] sm:$0xff]   ;;  %v1934_v13 = vld [vmem:[%s2272_s30 + $0x28] sm:$0xff]   ;;  %1870 = vmatpush3.bf16.msra.mxu1 %v1947_v26 }
  0x12   : > { %v1935_v14 = vld [vmem:[%s2272_s30 + $0x30] sm:$0xff]   ;;  %v1936_v15 = vld [vmem:[%s2272_s30 + $0x38] sm:$0xff]   ;;  %v1937_v16 = vld [vmem:[%s2272_s30 + $0x40] sm:$0xff]   ;;  %1871 = vmatprep.subr.bf16.mxu1 %v1948_v27 }
  0x13   : > { %1824 = vmatpush3.bf16.msra.mxu0 %v1924_v3  ;;  %v1938_v17 = vld [vmem:[%s2272_s30 + $0x48] sm:$0xff]   ;;  %v1939_v18 = vld [vmem:[%s2272_s30 + $0x50] sm:$0xff]   ;;  %v1940_v19 = vld [vmem:[%s2272_s30 + $0x58] sm:$0xff]  }
  0x14   : > { %1825 = vmatprep.subr.bf16.mxu0 %v1925_v5  ;;  %v1941_v20 = vld [vmem:[%s2272_s30 + $0x60] sm:$0xff]   ;;  %v1942_v21 = vld [vmem:[%s2272_s30 + $0x68] sm:$0xff]   ;;  %v1943_v22 = vld [vmem:[%s2272_s30 + $0x70] sm:$0xff]  }
  0x15   : > { %v1944_v23 = vld [vmem:[%s2272_s30 + $0x78] sm:$0xff]   ;;  %1872 = vmatpush3.bf16.msra.mxu1 %v1948_v27 }
  0x16   : > { %1873 = vmatprep.subr.bf16.mxu1 %v1949_v28 }
  0x17   : > { %1826 = vmatpush3.bf16.msra.mxu0 %v1925_v5 }
  0x18   : > { %1827 = vmatprep.subr.bf16.mxu0 %v1926_v6 }
  0x19   : > { %1874 = vmatpush3.bf16.msra.mxu1 %v1949_v28 }
  0x1a   : > { %1875 = vmatprep.subr.bf16.mxu1 %v1950_v29 }
  0x1b   : > { %1828 = vmatpush3.bf16.msra.mxu0 %v1926_v6 }
  0x1c   : > { %1829 = vmatprep.subr.bf16.mxu0 %v1927_v7 }
  0x1d   : > { %1876 = vmatpush3.bf16.msra.mxu1 %v1950_v29 }
  0x1e   : > { %1877 = vmatprep.subr.bf16.mxu1 %v1951_v30 }
  0x1f   : > { %1830 = vmatpush3.bf16.msra.mxu0 %v1927_v7 }
  0x20   : > { %1831 = vmatprep.subr.bf16.mxu0 %v1928_v8 }
  0x21   : > { %1878 = vmatpush3.bf16.msra.mxu1 %v1951_v30 }
  0x22   : > { %1879 = vmatprep.subr.bf16.mxu1 %v1952_v31 }
  0x23   : > { %1832 = vmatpush3.bf16.msra.mxu0 %v1928_v8 }
  0x25   : > { %1880 = vmatpush3.bf16.msra.mxu1 %v1952_v31 }
  0x26   : > { %1834 = vmatmul.mubr.bf16.vlgmr.msra.gmra.mrb[0].mxu0 %v1930_v9 }
  0x27   : > { %1837 = vmatprep.mubr.bf16.mxu0 %v1931_v10 }
  0x2e   : > { %1838 = vmatmul.mubr.bf16.gmra.mrb[4].mxu0 %v1932_v11 }
  0x2f   : > { %1841 = vmatprep.mubr.bf16.mxu0 %v1933_v12 }
  0x36   : > { %1842 = vmatmul.mubr.bf16.gmra.mrb[8].mxu0 %v1934_v13 }
  0x37   : > { %1845 = vmatprep.mubr.bf16.mxu0 %v1935_v14 }
  0x3e   : > { %1846 = vmatmul.mubr.bf16.gmra.mrb[12].mxu0 %v1936_v15 }
  0x3f   : > { %1849 = vmatprep.mubr.bf16.mxu0 %v1937_v16 }
  0x46   : > { %1850 = vmatmul.mubr.bf16.gmra.mrb[16].mxu0 %v1938_v17 }
  0x47   : > { %1853 = vmatprep.mubr.bf16.mxu0 %v1939_v18 }
  0x4e   : > { %1854 = vmatmul.mubr.bf16.gmra.mrb[20].mxu0 %v1940_v19 }
  0x4f   : > { %1857 = vmatprep.mubr.bf16.mxu0 %v1941_v20 }
  0x56   : > { %1858 = vmatmul.mubr.bf16.gmra.mrb[24].mxu0 %v1942_v21 }
  0x57   : > { %1861 = vmatprep.mubr.bf16.mxu0 %v1943_v22 }
  0x5e   : > { %1862 = vmatmul.mubr.bf16.gmra.mrb[28].mxu0 %v1944_v23 }
  0xf9   : > { %v1835_v33 = vpop.f32.mrb[0].mxu0 }
  0xfa   : > { %v2335_v34 = vadd.f32 %v1835_v33, %v2332_v32  ;;  %v462_v35 = vpop.f32.mrb[1].mxu0 }
  0xfb   : > { %v2338_v36 = vadd.f32 %v2332_v32, %v462_v35  ;;  %v1836_v37 = vpop.f32.mrb[2].mxu0 }
  0xfc   : > { %v1537_v38 = vmul.f32 -1.442695, %v2335_v34  ;;  %v2342_v39 = vadd.f32 %v1836_v37, %v2332_v32  ;;  %v465_v40 = vpop.f32.mrb[3].mxu0 }
  0xfd   : > { %v1535_v41 = vmul.f32 -1.442695, %v2338_v36  ;;  %v2346_v42 = vadd.f32 %v2332_v32, %v465_v40 }
  0xfe   : > { %1953 = vpow2.f32 %v1537_v38  ;;  %v1538_v43 = vmul.f32 -1.442695, %v2342_v39 }
  0xff   : > { %1955 = vpow2.f32 %v1535_v41  ;;  %v1536_v44 = vmul.f32 -1.442695, %v2346_v42 }
 0x100   : > { %1957 = vpow2.f32 %v1538_v43 }
 0x101   : > { %1959 = vpow2.f32 %v1536_v44  ;;  %v1839_v45 = vpop.f32.mrb[4].mxu0 }
 0x102   : > { %v2351_v46 = vadd.f32 %v1839_v45, %v2332_v32  ;;  %v478_v47 = vpop.f32.mrb[5].mxu0 }
 0x103   : > { %v2354_v48 = vadd.f32 %v2332_v32, %v478_v47  ;;  %v1840_v49 = vpop.f32.mrb[6].mxu0 }
 0x104   : > { %v1541_v50 = vmul.f32 -1.442695, %v2351_v46  ;;  %v2358_v51 = vadd.f32 %v1840_v49, %v2332_v32  ;;  %v481_v52 = vpop.f32.mrb[7].mxu0 }
 0x105   : > { %v1539_v53 = vmul.f32 -1.442695, %v2354_v48  ;;  %v2362_v54 = vadd.f32 %v2332_v32, %v481_v52 }
 0x106   : > { %1961 = vpow2.f32 %v1541_v50  ;;  %v1542_v55 = vmul.f32 -1.442695, %v2358_v51 }
 0x107   : > { %1963 = vpow2.f32 %v1539_v53  ;;  %v1540_v56 = vmul.f32 -1.442695, %v2362_v54 }
 0x108   : > { %v1954_v57 = vpop.eup %1953  ;;  %1965 = vpow2.f32 %v1542_v55 }
 0x109   : > { %v1956_v58 = vpop.eup %1955  ;;  %v687_v59 = vadd.f32 1.0, %v1954_v57  ;;  %1967 = vpow2.f32 %v1540_v56  ;;  %v1843_v60 = vpop.f32.mrb[8].mxu0 }
 0x10a   : > { %v1958_v61 = vpop.eup %1957  ;;  %v685_v62 = vadd.f32 1.0, %v1956_v58  ;;  %v2367_v63 = vadd.f32 %v1843_v60, %v2332_v32  ;;  %v494_v0 = vpop.f32.mrb[9].mxu0 }
 0x10b   : > { %v1960_v1 = vpop.eup %1959  ;;  %1969 = vrcp.f32 %v687_v59  ;;  %v688_v2 = vadd.f32 1.0, %v1958_v61  ;;  %v2370_v3 = vadd.f32 %v2332_v32, %v494_v0  ;;  %v1844_v4 = vpop.f32.mrb[10].mxu0 }
 0x10c   : > { %1971 = vrcp.f32 %v685_v62  ;;  %v686_v5 = vadd.f32 1.0, %v1960_v1  ;;  %v1545_v6 = vmul.f32 -1.442695, %v2367_v63  ;;  %v2374_v7 = vadd.f32 %v1844_v4, %v2332_v32  ;;  %v497_v8 = vpop.f32.mrb[11].mxu0 }
 0x10d   : > { %1973 = vrcp.f32 %v688_v2  ;;  %v1543_v9 = vmul.f32 -1.442695, %v2370_v3  ;;  %v2378_v10 = vadd.f32 %v2332_v32, %v497_v8 }
 0x10e   : > { %1975 = vrcp.f32 %v686_v5  ;;  %v1546_v11 = vmul.f32 -1.442695, %v2374_v7 }
 0x10f   : > { %1977 = vpow2.f32 %v1545_v6  ;;  %v1544_v12 = vmul.f32 -1.442695, %v2378_v10 }
 0x110   : > { %v1962_v13 = vpop.eup %1961  ;;  %1979 = vpow2.f32 %v1543_v9 }
 0x111   : > { %v1964_v14 = vpop.eup %1963  ;;  %v691_v15 = vadd.f32 1.0, %v1962_v13  ;;  %1981 = vpow2.f32 %v1546_v11  ;;  %v1847_v16 = vpop.f32.mrb[12].mxu0 }
 0x112   : > { %v1966_v17 = vpop.eup %1965  ;;  %v689_v18 = vadd.f32 1.0, %v1964_v14  ;;  %1983 = vpow2.f32 %v1544_v12  ;;  %v2383_v19 = vadd.f32 %v1847_v16, %v2332_v32  ;;  %v510_v20 = vpop.f32.mrb[13].mxu0 }
 0x113   : > { %v1968_v21 = vpop.eup %1967  ;;  %1985 = vrcp.f32 %v691_v15  ;;  %v692_v22 = vadd.f32 1.0, %v1966_v17  ;;  %v2386_v23 = vadd.f32 %v2332_v32, %v510_v20  ;;  %v1848_v24 = vpop.f32.mrb[14].mxu0 }
 0x114   : > { %1987 = vrcp.f32 %v689_v18  ;;  %v690_v25 = vadd.f32 1.0, %v1968_v21  ;;  %v1549_v26 = vmul.f32 -1.442695, %v2383_v19  ;;  %v2390_v27 = vadd.f32 %v1848_v24, %v2332_v32  ;;  %v513_v28 = vpop.f32.mrb[15].mxu0 }
 0x115   : > { %v1970_v29 = vpop.eup %1969  ;;  %1989 = vrcp.f32 %v692_v22  ;;  %v1547_v30 = vmul.f32 -1.442695, %v2386_v23  ;;  %v2394_v31 = vadd.f32 %v2332_v32, %v513_v28 }
 0x116   : > { %v1972_v33 = vpop.eup %1971  ;;  %1991 = vrcp.f32 %v690_v25  ;;  %v1550_v35 = vmul.f32 -1.442695, %v2390_v27  ;;  %v783_v41 = vmul.f32 %v1970_v29, %v2335_v34 }
 0x117   : > { %v1974_v37 = vpop.eup %1973  ;;  %1993 = vpow2.f32 %v1549_v26  ;;  %v1548_v38 = vmul.f32 -1.442695, %v2394_v31  ;;  %v781_v47 = vmul.f32 %v1972_v33, %v2338_v36 }
 0x118   : > { %v1976_v40 = vpop.eup %1975  ;;  %v784_v43 = vmul.f32 %v1974_v37, %v2342_v39  ;;  %1995 = vpow2.f32 %v1547_v30 }
 0x119   : > { %v1978_v44 = vpop.eup %1977  ;;  %1997 = vpow2.f32 %v1550_v35  ;;  %v1851_v45 = vpop.f32.mrb[16].mxu0  ;;  %v782_v49 = vmul.f32 %v1976_v40, %v2346_v42 }
 0x11a   : > { %v1980_v50 = vpop.eup %1979  ;;  %v695_v52 = vadd.f32 1.0, %v1978_v44  ;;  %1999 = vpow2.f32 %v1548_v38  ;;  %v2403_v53 = vadd.f32 %v1851_v45, %v2332_v32  ;;  %v526_v55 = vpop.f32.mrb[17].mxu0  ;;  %v814_v56 = vpack.c.bf16 %v784_v43, %v783_v41 }
 0x11b   : > { %v1982_v57 = vpop.eup %1981  ;;  %v693_v34 = vadd.f32 1.0, %v1980_v50  ;;  %v2406_v39 = vadd.f32 %v2332_v32, %v526_v55  ;;  %v1852_v58 = vpop.f32.mrb[18].mxu0  ;;  %v813_v59 = vpack.c.bf16 %v782_v49, %v781_v47 }
 0x11c   : > { %v1984_v60 = vpop.eup %1983  ;;  %2001 = vrcp.f32 %v695_v52  ;;  %v696_v36 = vadd.f32 1.0, %v1982_v57  ;;  %v1553_v42 = vmul.f32 -1.442695, %v2403_v53  ;;  %v2410_v61 = vadd.f32 %v1852_v58, %v2332_v32  ;;  %v529_v62 = vpop.f32.mrb[19].mxu0 }
 0x11d   : > { %v1986_v0 = vpop.eup %1985  ;;  %2003 = vrcp.f32 %v693_v34  ;;  %v694_v1 = vadd.f32 1.0, %v1984_v60  ;;  %v1551_v2 = vmul.f32 -1.442695, %v2406_v39  ;;  %v2414_v4 = vadd.f32 %v2332_v32, %v529_v62  ;;  %1881 = vmatprep.mubr.bf16.mxu1 %v813_v59 }
 0x11e   : > { %v1988_v5 = vpop.eup %1987  ;;  %2005 = vrcp.f32 %v696_v36  ;;  %v1554_v6 = vmul.f32 -1.442695, %v2410_v61  ;;  %1882 = vmatmul.mubr.bf16.vlgmr.msra.gmra.mrb[0].mxu1 %v814_v56  ;;  %v787_v12 = vmul.f32 %v1986_v0, %v2351_v46 }
 0x11f   : > { %v1990_v8 = vpop.eup %1989  ;;  %2007 = vrcp.f32 %v694_v1  ;;  %v1552_v9 = vmul.f32 -1.442695, %v2414_v4  ;;  %v785_v15 = vmul.f32 %v1988_v5, %v2354_v48 }
 0x120   : > { %v1992_v11 = vpop.eup %1991  ;;  %v788_v13 = vmul.f32 %v1990_v8, %v2358_v51  ;;  %2009 = vpow2.f32 %v1553_v42 }
 0x121   : > { %v1994_v14 = vpop.eup %1993  ;;  %v786_v16 = vmul.f32 %v1992_v11, %v2362_v54  ;;  %2011 = vpow2.f32 %v1551_v2  ;;  %v1855_v17 = vpop.f32.mrb[20].mxu0 }
 0x122   : > { %v1996_v18 = vpop.eup %1995  ;;  %v699_v20 = vadd.f32 1.0, %v1994_v14  ;;  %2013 = vpow2.f32 %v1554_v6  ;;  %v2423_v21 = vadd.f32 %v1855_v17, %v2332_v32  ;;  %v542_v22 = vpop.f32.mrb[21].mxu0  ;;  %v816_v24 = vpack.c.bf16 %v788_v13, %v787_v12 }
 0x123   : > { %v1998_v25 = vpop.eup %1997  ;;  %v697_v46 = vadd.f32 1.0, %v1996_v18  ;;  %2015 = vpow2.f32 %v1552_v9  ;;  %v2426_v51 = vadd.f32 %v2332_v32, %v542_v22  ;;  %v1856_v26 = vpop.f32.mrb[22].mxu0  ;;  %v815_v48 = vpack.c.bf16 %v786_v16, %v785_v15 }
 0x124   : > { %v2000_v28 = vpop.eup %1999  ;;  %2017 = vrcp.f32 %v699_v20  ;;  %v700_v54 = vadd.f32 1.0, %v1998_v25  ;;  %v1557_v29 = vmul.f32 -1.442695, %v2423_v21  ;;  %v2430_v30 = vadd.f32 %v1856_v26, %v2332_v32  ;;  %v545_v33 = vpop.f32.mrb[23].mxu0 }
 0x125   : > { %2019 = vrcp.f32 %v697_v46  ;;  %v698_v35 = vadd.f32 1.0, %v2000_v28  ;;  %v1555_v37 = vmul.f32 -1.442695, %v2426_v51  ;;  %v2434_v38 = vadd.f32 %v2332_v32, %v545_v33  ;;  %1885 = vmatprep.mubr.bf16.mxu1 %v815_v48 }
 0x126   : > { %v2002_v40 = vpop.eup %2001  ;;  %2021 = vrcp.f32 %v700_v54  ;;  %v1558_v41 = vmul.f32 -1.442695, %v2430_v30  ;;  %1886 = vmatmul.mubr.bf16.gmra.mrb[4].mxu1 %v816_v24 }
 0x127   : > { %v2004_v43 = vpop.eup %2003  ;;  %2023 = vrcp.f32 %v698_v35  ;;  %v1556_v44 = vmul.f32 -1.442695, %v2434_v38  ;;  %v791_v49 = vmul.f32 %v2002_v40, %v2367_v63 }
 0x128   : > { %v2006_v45 = vpop.eup %2005  ;;  %2025 = vpow2.f32 %v1557_v29  ;;  %v789_v56 = vmul.f32 %v2004_v43, %v2370_v3 }
 0x129   : > { %v2008_v47 = vpop.eup %2007  ;;  %v792_v50 = vmul.f32 %v2006_v45, %v2374_v7  ;;  %2027 = vpow2.f32 %v1555_v37  ;;  %v1859_v52 = vpop.f32.mrb[24].mxu0 }
 0x12a   : > { %v2010_v55 = vpop.eup %2009  ;;  %v790_v57 = vmul.f32 %v2008_v47, %v2378_v10  ;;  %2029 = vpow2.f32 %v1558_v41  ;;  %v2443_v34 = vadd.f32 %v1859_v52, %v2332_v32  ;;  %v558_v58 = vpop.f32.mrb[25].mxu0 }
 0x12b   : > { %v2012_v59 = vpop.eup %2011  ;;  %v703_v60 = vadd.f32 1.0, %v2010_v55  ;;  %2031 = vpow2.f32 %v1556_v44  ;;  %v2446_v36 = vadd.f32 %v2332_v32, %v558_v58  ;;  %v1860_v63 = vpop.f32.mrb[26].mxu0  ;;  %v818_v7 = vpack.c.bf16 %v792_v50, %v791_v49 }
 0x12c   : > { %v2014_v42 = vpop.eup %2013  ;;  %v701_v62 = vadd.f32 1.0, %v2012_v59  ;;  %v2449_v0 = vadd.f32 %v1860_v63, %v2332_v32  ;;  %v561_v3 = vpop.f32.mrb[27].mxu0  ;;  %v817_v10 = vpack.c.bf16 %v790_v57, %v789_v56  ;;  %v1561_v5 = vmul.f32 -1.442695, %v2443_v34 }
 0x12d   : > { %v2016_v1 = vpop.eup %2015  ;;  %2033 = vrcp.f32 %v703_v60  ;;  %v704_v2 = vadd.f32 1.0, %v2014_v42  ;;  %v2453_v6 = vadd.f32 %v2332_v32, %v561_v3  ;;  %v1559_v11 = vmul.f32 -1.442695, %v2446_v36 }
 0x12e   : > { %v2018_v8 = vpop.eup %2017  ;;  %2035 = vrcp.f32 %v701_v62  ;;  %v702_v9 = vadd.f32 1.0, %v2016_v1  ;;  %1889 = vmatprep.mubr.bf16.mxu1 %v817_v10  ;;  %v1562_v13 = vmul.f32 -1.442695, %v2449_v0 }
 0x12f   : > { %v2020_v12 = vpop.eup %2019  ;;  %2037 = vrcp.f32 %v704_v2  ;;  %1890 = vmatmul.mubr.bf16.gmra.mrb[8].mxu1 %v818_v7  ;;  %v1560_v15 = vmul.f32 -1.442695, %v2453_v6  ;;  %v795_v17 = vmul.f32 %v2018_v8, %v2383_v19 }
 0x130   : > { %v2022_v14 = vpop.eup %2021  ;;  %2039 = vrcp.f32 %v702_v9 }
 0x131   : > { %v2024_v16 = vpop.eup %2023  ;;  %v796_v18 = vmul.f32 %v2022_v14, %v2390_v27  ;;  %2041 = vpow2.f32 %v1561_v5  ;;  %v1863_v20 = vpop.f32.mrb[28].mxu0  ;;  %v793_v27 = vmul.f32 %v2020_v12, %v2386_v23 }
 0x132   : > { %v2026_v22 = vpop.eup %2025  ;;  %v794_v24 = vmul.f32 %v2024_v16, %v2394_v31  ;;  %2043 = vpow2.f32 %v1559_v11  ;;  %v2462_v25 = vadd.f32 %v1863_v20, %v2332_v32  ;;  %v574_v46 = vpop.f32.mrb[29].mxu0 }
 0x133   : > { %v2028_v26 = vpop.eup %2027  ;;  %v707_v48 = vadd.f32 1.0, %v2026_v22  ;;  %2045 = vpow2.f32 %v1562_v13  ;;  %v2465_v28 = vadd.f32 %v2332_v32, %v574_v46  ;;  %v1864_v54 = vpop.f32.mrb[30].mxu0  ;;  %v820_v19 = vpack.c.bf16 %v796_v18, %v795_v17 }
 0x134   : > { %v2030_v29 = vpop.eup %2029  ;;  %v705_v33 = vadd.f32 1.0, %v2028_v26  ;;  %2047 = vpow2.f32 %v1560_v15  ;;  %v2469_v31 = vadd.f32 %v1864_v54, %v2332_v32  ;;  %v577_v35 = vpop.f32.mrb[31].mxu0  ;;  %v1565_v41 = vmul.f32 -1.442695, %v2462_v25 }
 0x135   : > { %v2032_v37 = vpop.eup %2031  ;;  %2049 = vrcp.f32 %v707_v48  ;;  %v708_v40 = vadd.f32 1.0, %v2030_v29  ;;  %v2473_v43 = vadd.f32 %v2332_v32, %v577_v35  ;;  %v1563_v45 = vmul.f32 -1.442695, %v2465_v28 }
 0x136   : > { %2051 = vrcp.f32 %v705_v33  ;;  %v706_v44 = vadd.f32 1.0, %v2032_v37  ;;  %v819_v47 = vpack.c.bf16 %v794_v24, %v793_v27  ;;  %v1566_v49 = vmul.f32 -1.442695, %v2469_v31 }
 0x137   : > { %v2034_v23 = vpop.eup %2033  ;;  %2053 = vrcp.f32 %v708_v40  ;;  %v1564_v52 = vmul.f32 -1.442695, %v2473_v43 }
 0x138   : > { %v2036_v50 = vpop.eup %2035  ;;  %2055 = vrcp.f32 %v706_v44  ;;  %1893 = vmatprep.mubr.bf16.mxu1 %v819_v47  ;;  %v799_v32 = vmul.f32 %v2034_v23, %v2403_v53 }
 0x139   : > { %v2038_v55 = vpop.eup %2037  ;;  %2057 = vpow2.f32 %v1565_v41  ;;  %1894 = vmatmul.mubr.bf16.gmra.mrb[12].mxu1 %v820_v19  ;;  %v797_v59 = vmul.f32 %v2036_v50, %v2406_v39 }
 0x13a   : > { %v2040_v56 = vpop.eup %2039  ;;  %v800_v57 = vmul.f32 %v2038_v55, %v2410_v61  ;;  %2059 = vpow2.f32 %v1563_v45 }
 0x13b   : > { %v2042_v58 = vpop.eup %2041  ;;  %v798_v60 = vmul.f32 %v2040_v56, %v2414_v4  ;;  %2061 = vpow2.f32 %v1566_v49 }
 0x13c   : > { %v2044_v63 = vpop.eup %2043  ;;  %v711_v7 = vadd.f32 1.0, %v2042_v58  ;;  %2063 = vpow2.f32 %v1564_v52  ;;  %v822_v42 = vpack.c.bf16 %v800_v57, %v799_v32 }
 0x13d   : > { %v2046_v62 = vpop.eup %2045  ;;  %v709_v3 = vadd.f32 1.0, %v2044_v63  ;;  %v821_v10 = vpack.c.bf16 %v798_v60, %v797_v59 }
 0x13e   : > { %v2048_v1 = vpop.eup %2047  ;;  %2065 = vrcp.f32 %v711_v7  ;;  %v712_v2 = vadd.f32 1.0, %v2046_v62 }
 0x13f   : > { %v2050_v53 = vpop.eup %2049  ;;  %2067 = vrcp.f32 %v709_v3  ;;  %v710_v61 = vadd.f32 1.0, %v2048_v1  ;;  %1897 = vmatprep.mubr.bf16.mxu1 %v821_v10 }
 0x140   : > { %v2052_v5 = vpop.eup %2051  ;;  %2069 = vrcp.f32 %v712_v2  ;;  %v803_v8 = vmul.f32 %v2050_v53, %v2423_v21 }
 0x141   : > { %v2054_v39 = vpop.eup %2053  ;;  %2071 = vrcp.f32 %v710_v61  ;;  %1898 = vmatmul.mubr.bf16.gmra.mrb[16].mxu1 %v822_v42  ;;  %v801_v12 = vmul.f32 %v2052_v5, %v2426_v51 }
 0x142   : > { %v2056_v4 = vpop.eup %2055  ;;  %v804_v9 = vmul.f32 %v2054_v39, %v2430_v30 }
 0x143   : > { %v2058_v11 = vpop.eup %2057  ;;  %v802_v13 = vmul.f32 %v2056_v4, %v2434_v38 }
 0x144   : > { %v2060_v14 = vpop.eup %2059  ;;  %v715_v15 = vadd.f32 1.0, %v2058_v11  ;;  %v824_v16 = vpack.c.bf16 %v804_v9, %v803_v8 }
 0x145   : > { %v2062_v17 = vpop.eup %2061  ;;  %v713_v18 = vadd.f32 1.0, %v2060_v14  ;;  %v823_v20 = vpack.c.bf16 %v802_v13, %v801_v12 }
 0x146   : > { %v2064_v22 = vpop.eup %2063  ;;  %2073 = vrcp.f32 %v715_v15  ;;  %v716_v24 = vadd.f32 1.0, %v2062_v17 }
 0x147   : > { %2075 = vrcp.f32 %v713_v18  ;;  %v714_v46 = vadd.f32 1.0, %v2064_v22  ;;  %1901 = vmatprep.mubr.bf16.mxu1 %v823_v20 }
 0x148   : > { %v2066_v21 = vpop.eup %2065  ;;  %2077 = vrcp.f32 %v716_v24 }
 0x149   : > { %v2068_v30 = vpop.eup %2067  ;;  %2079 = vrcp.f32 %v714_v46  ;;  %1902 = vmatmul.mubr.bf16.gmra.mrb[20].mxu1 %v824_v16  ;;  %v807_v38 = vmul.f32 %v2066_v21, %v2443_v34 }
 0x14a   : > { %v2070_v51 = vpop.eup %2069  ;;  %v805_v54 = vmul.f32 %v2068_v30, %v2446_v36 }
 0x14b   : > { %v2072_v26 = vpop.eup %2071  ;;  %v808_v48 = vmul.f32 %v2070_v51, %v2449_v0 }
 0x14c   : > { %v806_v19 = vmul.f32 %v2072_v26, %v2453_v6  ;;  %v2497_v6 = vld [vmem:[%s2689_s4] ss:$0 sm:$0xff] }
 0x14d   : > { %v826_v29 = vpack.c.bf16 %v808_v48, %v807_v38 }
 0x14e   : > { %v825_v27 = vpack.c.bf16 %v806_v19, %v805_v54 }
 0x150   : > { %v2074_v33 = vpop.eup %2073  ;;  %1905 = vmatprep.mubr.bf16.mxu1 %v825_v27 }
 0x151   : > { %v2076_v35 = vpop.eup %2075  ;;  %1906 = vmatmul.mubr.bf16.gmra.mrb[24].mxu1 %v826_v29  ;;  %v811_v41 = vmul.f32 %v2074_v33, %v2462_v25 }
 0x152   : > { %v2078_v37 = vpop.eup %2077  ;;  %v809_v34 = vmul.f32 %v2076_v35, %v2465_v28 }
 0x153   : > { %v2080_v40 = vpop.eup %2079  ;;  %v812_v44 = vmul.f32 %v2078_v37, %v2469_v31 }
 0x154   : > { %v810_v0 = vmul.f32 %v2080_v40, %v2473_v43 }
 0x155   : > { %v828_v45 = vpack.c.bf16 %v812_v44, %v811_v41 }
 0x156   : > { %v827_v36 = vpack.c.bf16 %v810_v0, %v809_v34 }
 0x158   : > { %1909 = vmatprep.mubr.bf16.mxu1 %v827_v36 }
 0x159   : > { %1910 = vmatmul.mubr.bf16.gmra.mrb[28].mxu1 %v828_v45 }
 0x1f1   : > { %v1883_v47 = vpop.f32.mrb[0].mxu1 }
 0x1f2   : > { %v2500_v23 = vadd.f32 %v1883_v47, %v2497_v6  ;;  %v934_v25 = vpop.f32.mrb[1].mxu1 }
 0x1f3   : > { %v2503_v31 = vadd.f32 %v2497_v6, %v934_v25  ;;  %v1884_v28 = vpop.f32.mrb[2].mxu1 }
 0x1f4   : > { %v1578_v43 = vmul.f32 -1.442695, %v2500_v23  ;;  %v2507_v49 = vadd.f32 %v1884_v28, %v2497_v6  ;;  %v937_v50 = vpop.f32.mrb[3].mxu1 }
 0x1f5   : > { %v1576_v52 = vmul.f32 -1.442695, %v2503_v31  ;;  %v2511_v55 = vadd.f32 %v2497_v6, %v937_v50 }
 0x1f6   : > { %2081 = vpow2.f32 %v1578_v43  ;;  %v1579_v56 = vmul.f32 -1.442695, %v2507_v49 }
 0x1f7   : > { %2083 = vpow2.f32 %v1576_v52  ;;  %v1577_v32 = vmul.f32 -1.442695, %v2511_v55 }
 0x1f8   : > { %2085 = vpow2.f32 %v1579_v56 }
 0x1f9   : > { %2087 = vpow2.f32 %v1577_v32  ;;  %v1887_v57 = vpop.f32.mrb[4].mxu1 }
 0x1fa   : > { %v2516_v58 = vadd.f32 %v1887_v57, %v2497_v6  ;;  %v950_v59 = vpop.f32.mrb[5].mxu1 }
 0x1fb   : > { %v2519_v60 = vadd.f32 %v2497_v6, %v950_v59  ;;  %v1888_v63 = vpop.f32.mrb[6].mxu1 }
 0x1fc   : > { %v1582_v7 = vmul.f32 -1.442695, %v2516_v58  ;;  %v2523_v42 = vadd.f32 %v1888_v63, %v2497_v6  ;;  %v953_v62 = vpop.f32.mrb[7].mxu1 }
 0x1fd   : > { %v1580_v3 = vmul.f32 -1.442695, %v2519_v60  ;;  %v2527_v10 = vadd.f32 %v2497_v6, %v953_v62 }
 0x1fe   : > { %2089 = vpow2.f32 %v1582_v7  ;;  %v1583_v1 = vmul.f32 -1.442695, %v2523_v42 }
 0x1ff   : > { %2091 = vpow2.f32 %v1580_v3  ;;  %v1581_v2 = vmul.f32 -1.442695, %v2527_v10 }
 0x200   : > { %v2082_v53 = vpop.eup %2081  ;;  %2093 = vpow2.f32 %v1583_v1 }
 0x201   : > { %v2084_v61 = vpop.eup %2083  ;;  %v1159_v5 = vadd.f32 1.0, %v2082_v53  ;;  %2095 = vpow2.f32 %v1581_v2 }
 0x202   : > { %v2086_v39 = vpop.eup %2085  ;;  %v1157_v4 = vadd.f32 1.0, %v2084_v61  ;;  %v1891_v8 = vpop.f32.mrb[8].mxu1 }
 0x203   : > { %v2088_v9 = vpop.eup %2087  ;;  %2097 = vrcp.f32 %v1159_v5  ;;  %v1160_v11 = vadd.f32 1.0, %v2086_v39  ;;  %v2532_v12 = vadd.f32 %v1891_v8, %v2497_v6  ;;  %v966_v13 = vpop.f32.mrb[9].mxu1 }
 0x204   : > { %2099 = vrcp.f32 %v1157_v4  ;;  %v1158_v14 = vadd.f32 1.0, %v2088_v9  ;;  %v2535_v15 = vadd.f32 %v2497_v6, %v966_v13  ;;  %v1892_v16 = vpop.f32.mrb[10].mxu1 }
 0x205   : > { %2101 = vrcp.f32 %v1160_v11  ;;  %v1586_v17 = vmul.f32 -1.442695, %v2532_v12  ;;  %v2539_v18 = vadd.f32 %v1892_v16, %v2497_v6  ;;  %v969_v20 = vpop.f32.mrb[11].mxu1 }
 0x206   : > { %2103 = vrcp.f32 %v1158_v14  ;;  %v1584_v22 = vmul.f32 -1.442695, %v2535_v15  ;;  %v2543_v24 = vadd.f32 %v2497_v6, %v969_v20 }
 0x207   : > { %2105 = vpow2.f32 %v1586_v17  ;;  %v1587_v46 = vmul.f32 -1.442695, %v2539_v18 }
 0x208   : > { %v2090_v21 = vpop.eup %2089  ;;  %2107 = vpow2.f32 %v1584_v22  ;;  %v1585_v30 = vmul.f32 -1.442695, %v2543_v24 }
 0x209   : > { %v2092_v51 = vpop.eup %2091  ;;  %v1163_v26 = vadd.f32 1.0, %v2090_v21  ;;  %2109 = vpow2.f32 %v1587_v46 }
 0x20a   : > { %v2094_v38 = vpop.eup %2093  ;;  %v1161_v48 = vadd.f32 1.0, %v2092_v51  ;;  %2111 = vpow2.f32 %v1585_v30 }
 0x20b   : > { %v2096_v54 = vpop.eup %2095  ;;  %2113 = vrcp.f32 %v1163_v26  ;;  %v1164_v19 = vadd.f32 1.0, %v2094_v38 }
 0x20c   : > { %2115 = vrcp.f32 %v1161_v48  ;;  %v1162_v29 = vadd.f32 1.0, %v2096_v54  ;;  %v1895_v27 = vpop.f32.mrb[12].mxu1 }
 0x20d   : > { %v2098_v33 = vpop.eup %2097  ;;  %2117 = vrcp.f32 %v1164_v19  ;;  %v2548_v35 = vadd.f32 %v1895_v27, %v2497_v6  ;;  %v982_v37 = vpop.f32.mrb[13].mxu1 }
 0x20e   : > { %v2100_v40 = vpop.eup %2099  ;;  %2119 = vrcp.f32 %v1162_v29  ;;  %v2551_v41 = vadd.f32 %v2497_v6, %v982_v37  ;;  %v1896_v44 = vpop.f32.mrb[14].mxu1  ;;  %v1255_v25 = vmul.f32 %v2098_v33, %v2500_v23 }
 0x20f   : > { %v2102_v34 = vpop.eup %2101  ;;  %v1590_v0 = vmul.f32 -1.442695, %v2548_v35  ;;  %v2555_v45 = vadd.f32 %v1896_v44, %v2497_v6  ;;  %v985_v36 = vpop.f32.mrb[15].mxu1  ;;  %v1253_v56 = vmul.f32 %v2100_v40, %v2503_v31 }
 0x210   : > { %v2104_v47 = vpop.eup %2103  ;;  %v1256_v28 = vmul.f32 %v2102_v34, %v2507_v49  ;;  %v1588_v43 = vmul.f32 -1.442695, %v2551_v41  ;;  %v2561_v50 = vadd.f32 %v2497_v6, %v985_v36 }
 0x211   : > { %v2106_v52 = vpop.eup %2105  ;;  %v1254_v32 = vmul.f32 %v2104_v47, %v2511_v55  ;;  %2121 = vpow2.f32 %v1590_v0  ;;  %v1591_v23 = vmul.f32 -1.442695, %v2555_v45 }
 0x212   : > { %v2108_v49 = vpop.eup %2107  ;;  %v1682_v57 = vpack.c.bf16 %v1256_v28, %v1255_v25  ;;  %v1167_v59 = vadd.f32 1.0, %v2106_v52  ;;  %2123 = vpow2.f32 %v1588_v43  ;;  %v1589_v1 = vmul.f32 -1.442695, %v2561_v50 }
 0x213   : > { %v2110_v63 = vpop.eup %2109  ;;  %v1677_v7 = vpack.c.bf16 %v1254_v32, %v1253_v56  ;;  %v1165_v31 = vadd.f32 1.0, %v2108_v49  ;;  %2125 = vpow2.f32 %v1591_v23 }
 0x214   : > { %v2112_v62 = vpop.eup %2111  ;;  %1754 = vst [vmem:[%s2569_s16 + $0x8] sm:$0xff] %v1682_v57   ;;  %2127 = vrcp.f32 %v1167_v59  ;;  %v1168_v3 = vadd.f32 1.0, %v2110_v63  ;;  %v1899_v2 = vpop.f32.mrb[16].mxu1 }
 0x215   : > { %v2114_v55 = vpop.eup %2113  ;;  %1678 = vst [vmem:[%s2569_s16] sm:$0xff] %v1677_v7   ;;  %2129 = vrcp.f32 %v1165_v31  ;;  %v1166_v53 = vadd.f32 1.0, %v2112_v62  ;;  %v2577_v61 = vadd.f32 %v1899_v2, %v2497_v6  ;;  %v998_v5 = vpop.f32.mrb[17].mxu1 }
 0x216   : > { %v2116_v39 = vpop.eup %2115  ;;  %2131 = vrcp.f32 %v1168_v3  ;;  %v2580_v4 = vadd.f32 %v2497_v6, %v998_v5  ;;  %v1900_v8 = vpop.f32.mrb[18].mxu1  ;;  %v1259_v11 = vmul.f32 %v2114_v55, %v2516_v58 }
 0x217   : > { %v2118_v9 = vpop.eup %2117  ;;  %2133 = vrcp.f32 %v1166_v53  ;;  %v1594_v13 = vmul.f32 -1.442695, %v2577_v61  ;;  %v2585_v14 = vadd.f32 %v1900_v8, %v2497_v6  ;;  %v1001_v16 = vpop.f32.mrb[19].mxu1  ;;  %v1257_v21 = vmul.f32 %v2116_v39, %v2519_v60 }
 0x218   : > { %v2120_v17 = vpop.eup %2119  ;;  %v1260_v20 = vmul.f32 %v2118_v9, %v2523_v42  ;;  %2135 = vpow2.f32 %v1589_v1  ;;  %v1592_v22 = vmul.f32 -1.442695, %v2580_v4  ;;  %v2590_v46 = vadd.f32 %v2497_v6, %v1001_v16 }
 0x219   : > { %v1258_v58 = vmul.f32 %v2120_v17, %v2527_v10  ;;  %2137 = vpow2.f32 %v1594_v13  ;;  %v1595_v30 = vmul.f32 -1.442695, %v2585_v14 }
 0x21a   : > { %v1692_v51 = vpack.c.bf16 %v1260_v20, %v1259_v11  ;;  %2139 = vpow2.f32 %v1592_v22  ;;  %v1593_v26 = vmul.f32 -1.442695, %v2590_v46 }
 0x21b   : > { %v2122_v38 = vpop.eup %2121  ;;  %v1687_v42 = vpack.c.bf16 %v1258_v58, %v1257_v21  ;;  %2141 = vpow2.f32 %v1595_v30 }
 0x21c   : > { %v2124_v48 = vpop.eup %2123  ;;  %1756 = vst [vmem:[%s2569_s16 + $0x18] sm:$0xff] %v1692_v51   ;;  %v1171_v54 = vadd.f32 1.0, %v2122_v38  ;;  %2143 = vpow2.f32 %v1593_v26  ;;  %v1903_v19 = vpop.f32.mrb[20].mxu1 }
 0x21d   : > { %v2126_v29 = vpop.eup %2125  ;;  %1755 = vst [vmem:[%s2569_s16 + $0x10] sm:$0xff] %v1687_v42   ;;  %v1169_v60 = vadd.f32 1.0, %v2124_v48  ;;  %v2599_v10 = vadd.f32 %v1903_v19, %v2497_v6  ;;  %v1014_v27 = vpop.f32.mrb[21].mxu1 }
 0x21e   : > { %v2128_v33 = vpop.eup %2127  ;;  %2145 = vrcp.f32 %v1171_v54  ;;  %v1172_v37 = vadd.f32 1.0, %v2126_v29  ;;  %v2602_v40 = vadd.f32 %v2497_v6, %v1014_v27  ;;  %v1904_v44 = vpop.f32.mrb[22].mxu1 }
 0x21f   : > { %v2130_v34 = vpop.eup %2129  ;;  %2147 = vrcp.f32 %v1169_v60  ;;  %v1598_v0 = vmul.f32 -1.442695, %v2599_v10  ;;  %v2606_v36 = vadd.f32 %v1904_v44, %v2497_v6  ;;  %v1017_v47 = vpop.f32.mrb[23].mxu1  ;;  %v1263_v56 = vmul.f32 %v2128_v33, %v2532_v12 }
 0x220   : > { %v2132_v25 = vpop.eup %2131  ;;  %2149 = vrcp.f32 %v1172_v37  ;;  %v1596_v28 = vmul.f32 -1.442695, %v2602_v40  ;;  %v2610_v43 = vadd.f32 %v2497_v6, %v1017_v47  ;;  %v1261_v57 = vmul.f32 %v2130_v34, %v2535_v15 }
 0x221   : > { %v2134_v52 = vpop.eup %2133  ;;  %v1264_v32 = vmul.f32 %v2132_v25, %v2539_v18  ;;  %2151 = vpow2.f32 %v1598_v0  ;;  %v1599_v23 = vmul.f32 -1.442695, %v2606_v36 }
 0x222   : > { %v2136_v49 = vpop.eup %2135  ;;  %v1262_v59 = vmul.f32 %v2134_v52, %v2543_v24  ;;  %2153 = vpow2.f32 %v1596_v28  ;;  %v1597_v63 = vmul.f32 -1.442695, %v2610_v43 }
 0x223   : > { %v2138_v7 = vpop.eup %2137  ;;  %v1702_v31 = vpack.c.bf16 %v1264_v32, %v1263_v56  ;;  %v1170_v62 = vadd.f32 1.0, %v2136_v49  ;;  %2155 = vpow2.f32 %v1599_v23 }
 0x224   : > { %v2140_v12 = vpop.eup %2139  ;;  %v1697_v3 = vpack.c.bf16 %v1262_v59, %v1261_v57  ;;  %v1175_v18 = vadd.f32 1.0, %v2138_v7  ;;  %2157 = vpow2.f32 %v1597_v63  ;;  %v1907_v1 = vpop.f32.mrb[24].mxu1 }
 0x225   : > { %v2142_v2 = vpop.eup %2141  ;;  %1758 = vst [vmem:[%s2569_s16 + $0x28] sm:$0xff] %v1702_v31   ;;  %2159 = vrcp.f32 %v1170_v62  ;;  %v1173_v55 = vadd.f32 1.0, %v2140_v12  ;;  %v2620_v15 = vadd.f32 %v1907_v1, %v2497_v6  ;;  %v1030_v24 = vpop.f32.mrb[25].mxu1 }
 0x226   : > { %v2144_v53 = vpop.eup %2143  ;;  %1757 = vst [vmem:[%s2569_s16 + $0x20] sm:$0xff] %v1697_v3   ;;  %2161 = vrcp.f32 %v1175_v18  ;;  %v1176_v5 = vadd.f32 1.0, %v2142_v2  ;;  %v2624_v39 = vadd.f32 %v2497_v6, %v1030_v24  ;;  %v1908_v8 = vpop.f32.mrb[26].mxu1 }
 0x227   : > { %2163 = vrcp.f32 %v1173_v55  ;;  %v1174_v9 = vadd.f32 1.0, %v2144_v53  ;;  %v1602_v11 = vmul.f32 -1.442695, %v2620_v15  ;;  %v2628_v13 = vadd.f32 %v1908_v8, %v2497_v6  ;;  %v1033_v16 = vpop.f32.mrb[27].mxu1 }
 0x228   : > { %v2146_v17 = vpop.eup %2145  ;;  %2165 = vrcp.f32 %v1176_v5  ;;  %v1600_v20 = vmul.f32 -1.442695, %v2624_v39  ;;  %v2632_v22 = vadd.f32 %v2497_v6, %v1033_v16 }
 0x229   : > { %v2148_v21 = vpop.eup %2147  ;;  %2167 = vrcp.f32 %v1174_v9  ;;  %v1603_v58 = vmul.f32 -1.442695, %v2628_v13  ;;  %v1267_v38 = vmul.f32 %v2146_v17, %v2548_v35 }
 0x22a   : > { %v2150_v30 = vpop.eup %2149  ;;  %2169 = vpow2.f32 %v1602_v11  ;;  %v1601_v51 = vmul.f32 -1.442695, %v2632_v22  ;;  %v1265_v34 = vmul.f32 %v2148_v21, %v2551_v41 }
 0x22b   : > { %v2152_v26 = vpop.eup %2151  ;;  %v1268_v42 = vmul.f32 %v2150_v30, %v2555_v45  ;;  %2171 = vpow2.f32 %v1600_v20 }
 0x22c   : > { %v2154_v48 = vpop.eup %2153  ;;  %v1179_v54 = vadd.f32 1.0, %v2152_v26  ;;  %2173 = vpow2.f32 %v1603_v58  ;;  %v1911_v19 = vpop.f32.mrb[28].mxu1 }
 0x22d   : > { %v2156_v29 = vpop.eup %2155  ;;  %v1712_v60 = vpack.c.bf16 %v1268_v42, %v1267_v38  ;;  %v1177_v27 = vadd.f32 1.0, %v2154_v48  ;;  %2175 = vpow2.f32 %v1601_v51  ;;  %v2639_v33 = vadd.f32 %v1911_v19, %v2497_v6  ;;  %v1046_v37 = vpop.f32.mrb[29].mxu1 }
 0x22e   : > { %v2158_v44 = vpop.eup %2157  ;;  %2177 = vrcp.f32 %v1179_v54  ;;  %v1180_v35 = vadd.f32 1.0, %v2156_v29  ;;  %v2643_v45 = vadd.f32 %v2497_v6, %v1046_v37  ;;  %v1912_v0 = vpop.f32.mrb[30].mxu1 }
 0x22f   : > { %v2160_v47 = vpop.eup %2159  ;;  %1760 = vst [vmem:[%s2569_s16 + $0x38] sm:$0xff] %v1712_v60   ;;  %2179 = vrcp.f32 %v1177_v27  ;;  %v1178_v25 = vadd.f32 1.0, %v2158_v44  ;;  %v1606_v28 = vmul.f32 -1.442695, %v2639_v33  ;;  %v2648_v52 = vadd.f32 %v1912_v0, %v2497_v6  ;;  %v1049_v56 = vpop.f32.mrb[31].mxu1 }
 0x230   : > { %v2162_v32 = vpop.eup %2161  ;;  %v1266_v23 = vmul.f32 %v2160_v47, %v2561_v50  ;;  %2181 = vrcp.f32 %v1180_v35  ;;  %v1604_v41 = vmul.f32 -1.442695, %v2643_v45  ;;  %v2653_v49 = vadd.f32 %v2497_v6, %v1049_v56 }
 0x231   : > { %v2164_v57 = vpop.eup %2163  ;;  %2183 = vrcp.f32 %v1178_v25  ;;  %v1607_v59 = vmul.f32 -1.442695, %v2648_v52  ;;  %v1271_v12 = vmul.f32 %v2162_v32, %v2577_v61 }
 0x232   : > { %v2166_v63 = vpop.eup %2165  ;;  %v1707_v7 = vpack.c.bf16 %v1266_v23, %v1265_v34  ;;  %2185 = vpow2.f32 %v1606_v28  ;;  %v1605_v31 = vmul.f32 -1.442695, %v2653_v49  ;;  %v1269_v6 = vmul.f32 %v2164_v57, %v2580_v4 }
 0x233   : > { %v2168_v62 = vpop.eup %2167  ;;  %v1272_v50 = vmul.f32 %v2166_v63, %v2585_v14  ;;  %2187 = vpow2.f32 %v1604_v41 }
 0x234   : > { %v2170_v3 = vpop.eup %2169  ;;  %1759 = vst [vmem:[%s2569_s16 + $0x30] sm:$0xff] %v1707_v7   ;;  %v1270_v18 = vmul.f32 %v2168_v62, %v2590_v46  ;;  %2189 = vpow2.f32 %v1607_v59 }
 0x235   : > { %v2172_v1 = vpop.eup %2171  ;;  %v1722_v2 = vpack.c.bf16 %v1272_v50, %v1271_v12  ;;  %v1183_v55 = vadd.f32 1.0, %v2170_v3  ;;  %2191 = vpow2.f32 %v1605_v31 }
 0x236   : > { %v2174_v24 = vpop.eup %2173  ;;  %v1717_v53 = vpack.c.bf16 %v1270_v18, %v1269_v6  ;;  %v1181_v5 = vadd.f32 1.0, %v2172_v1 }
 0x237   : > { %v2176_v61 = vpop.eup %2175  ;;  %1762 = vst [vmem:[%s2569_s16 + $0x48] sm:$0xff] %v1722_v2   ;;  %2193 = vrcp.f32 %v1183_v55  ;;  %v1184_v14 = vadd.f32 1.0, %v2174_v24 }
 0x238   : > { %v2178_v8 = vpop.eup %2177  ;;  %1761 = vst [vmem:[%s2569_s16 + $0x40] sm:$0xff] %v1717_v53   ;;  %2195 = vrcp.f32 %v1181_v5  ;;  %v1182_v9 = vadd.f32 1.0, %v2176_v61 }
 0x239   : > { %v2180_v11 = vpop.eup %2179  ;;  %2197 = vrcp.f32 %v1184_v14  ;;  %v1275_v16 = vmul.f32 %v2178_v8, %v2599_v10 }
 0x23a   : > { %v2182_v4 = vpop.eup %2181  ;;  %2199 = vrcp.f32 %v1182_v9  ;;  %v1273_v21 = vmul.f32 %v2180_v11, %v2602_v40 }
 0x23b   : > { %v2184_v46 = vpop.eup %2183  ;;  %v1276_v17 = vmul.f32 %v2182_v4, %v2606_v36 }
 0x23c   : > { %v2186_v20 = vpop.eup %2185  ;;  %v1274_v58 = vmul.f32 %v2184_v46, %v2610_v43 }
 0x23d   : > { %v2188_v30 = vpop.eup %2187  ;;  %v1732_v51 = vpack.c.bf16 %v1276_v17, %v1275_v16  ;;  %v1187_v26 = vadd.f32 1.0, %v2186_v20 }
 0x23e   : > { %v2190_v38 = vpop.eup %2189  ;;  %v1727_v42 = vpack.c.bf16 %v1274_v58, %v1273_v21  ;;  %v1185_v48 = vadd.f32 1.0, %v2188_v30 }
 0x23f   : > { %v2192_v54 = vpop.eup %2191  ;;  %1764 = vst [vmem:[%s2569_s16 + $0x58] sm:$0xff] %v1732_v51   ;;  %2201 = vrcp.f32 %v1187_v26  ;;  %v1188_v19 = vadd.f32 1.0, %v2190_v38 }
 0x240   : > { %1763 = vst [vmem:[%s2569_s16 + $0x50] sm:$0xff] %v1727_v42   ;;  %2203 = vrcp.f32 %v1185_v48  ;;  %v1186_v10 = vadd.f32 1.0, %v2192_v54 }
 0x241   : > { %v2194_v36 = vpop.eup %2193  ;;  %2205 = vrcp.f32 %v1188_v19 }
 0x242   : > { %v2196_v40 = vpop.eup %2195  ;;  %2207 = vrcp.f32 %v1186_v10  ;;  %v1279_v60 = vmul.f32 %v2194_v36, %v2620_v15 }
 0x243   : > { %v2198_v43 = vpop.eup %2197  ;;  %v1277_v37 = vmul.f32 %v2196_v40, %v2624_v39 }
 0x244   : > { %v2200_v29 = vpop.eup %2199  ;;  %v1280_v27 = vmul.f32 %v2198_v43, %v2628_v13 }
 0x245   : > { %v1278_v44 = vmul.f32 %v2200_v29, %v2632_v22 }
 0x246   : > { %v1742_v34 = vpack.c.bf16 %v1280_v27, %v1279_v60 }
 0x247   : > { %v1737_v35 = vpack.c.bf16 %v1278_v44, %v1277_v37 }
 0x248   : > { %1766 = vst [vmem:[%s2569_s16 + $0x68] sm:$0xff] %v1742_v34  }
 0x249   : > { %v2202_v0 = vpop.eup %2201  ;;  %1765 = vst [vmem:[%s2569_s16 + $0x60] sm:$0xff] %v1737_v35  }
 0x24a   : > { %v2204_v47 = vpop.eup %2203  ;;  %v1283_v56 = vmul.f32 %v2202_v0, %v2639_v33 }
 0x24b   : > { %v2206_v25 = vpop.eup %2205  ;;  %v1281_v13 = vmul.f32 %v2204_v47, %v2643_v45 }
 0x24c   : > { %v2208_v28 = vpop.eup %2207  ;;  %v1284_v15 = vmul.f32 %v2206_v25, %v2648_v52 }
 0x24d   : > { %v1282_v39 = vmul.f32 %v2208_v28, %v2653_v49 }
 0x24e   : > { %v1752_v32 = vpack.c.bf16 %v1284_v15, %v1283_v56 }
 0x24f   : > { %v1747_v23 = vpack.c.bf16 %v1282_v39, %v1281_v13 }
 0x250   : > { %1768 = vst [vmem:[%s2569_s16 + $0x78] sm:$0xff] %v1752_v32  }
 0x251   : > { %1767 = vst [vmem:[%s2569_s16 + $0x70] sm:$0xff] %v1747_v23  }
 0x252 PF: > { %s15_s18 = sadd.s32 1, %s2215_s18  }
 0x253   : > { %p12_p4 = scmp.ge.s32.totalorder %s15_s18, 4  }
 0x255   :  { %14 = sbr.rel (!%p12_p4) target bundleno = 1 (0x1), region = 70 }

</bundles_post_ra>
